<compile_context>
chip_gen: v7x
topology: tpu7x:2x2x1
jax: 0.10.0
libtpu: 0.0.40
codegen_flags: <defaults>
</compile_context>

<pallas_src>
import jax
import jax.numpy as jnp
from jax.experimental import pallas as pl
from jax.experimental.pallas import tpu as pltpu


_LANE = 128      # lane width: last-dim alignment for lane-dense loads/stores
_SUBLANE = 8     # f32 sublane granularity for the row tile


def _round_up(x, m):
    return (x + m - 1) // m * m


# --------------------------------------------------------------------------
# Kernel
# --------------------------------------------------------------------------
def _ffn_kernel(x_ref, w1t_ref, b1_ref, w2t_ref, b2_ref, o_ref, acc_ref):
    # Grid: (row_tile index i, ff_chunk index k)
    # x_ref:   (TM, Ep)        input row tile (resident across k)
    # w1t_ref: (Ep, Fc)        W1^T chunk (streamed over k)
    # b1_ref:  (1,  Fc) f32    bias chunk
    # w2t_ref: (Fc, Ep)        W2^T chunk (streamed over k)
    # b2_ref:  (1,  Ep) f32
    # o_ref:   (TM, Ep)        output tile (resident across k)
    # acc_ref: (TM, Ep) f32    VMEM scratch accumulator
    k = pl.program_id(1)

    x = x_ref[...].astype(w1t_ref.dtype)
    h = jnp.dot(x, w1t_ref[...], preferred_element_type=jnp.float32)
    h = jnp.maximum(h + b1_ref[...], 0.0)                       # bias + ReLU
    partial = jnp.dot(h.astype(w2t_ref.dtype), w2t_ref[...],
                      preferred_element_type=jnp.float32)

    @pl.when(k == 0)
    def _():                      # no zero-fill: overwrite on the first chunk
        acc_ref[...] = partial

    @pl.when(k != 0)
    def _():
        acc_ref[...] += partial

    @pl.when(k == pl.num_programs(1) - 1)
    def _():                      # single writeback per tile (1 vst on v5e)
        o_ref[...] = (acc_ref[...] + b2_ref[...]).astype(o_ref.dtype)


# --------------------------------------------------------------------------
# Parameter preparation (done once, NOT per forward call)
# --------------------------------------------------------------------------
def prepare_ffn_params(w1, b1, w2, b2, *, dtype=None):
    """Pre-transpose and lane-pad the nn.Linear parameters.

    w1: (ff, emb), b1: (ff,), w2: (emb, ff), b2: (emb,)  -- PyTorch layout.
    Feature dims are zero-padded to multiples of 128; zero padding is exact
    (padded ff columns give ReLU(0)=0, padded emb columns output 0).
    Pass dtype=jnp.bfloat16 for the bf16 MXU path on v6e/v7x.
    """
    ff, emb = w1.shape
    emb_p = _round_up(emb, _LANE)
    ff_p = _round_up(ff, _LANE)
    if dtype is None:
        dtype = w1.dtype

    w1t = jnp.zeros((emb_p, ff_p), dtype).at[:emb, :ff].set(w1.T.astype(dtype))
    w2t = jnp.zeros((ff_p, emb_p), dtype).at[:ff, :emb].set(w2.T.astype(dtype))
    b1p = jnp.zeros((1, ff_p), jnp.float32).at[0, :ff].set(b1.astype(jnp.float32))
    b2p = jnp.zeros((1, emb_p), jnp.float32).at[0, :emb].set(b2.astype(jnp.float32))
    return dict(w1t=w1t, b1=b1p, w2t=w2t, b2=b2p, emb=emb, ff=ff)


# --------------------------------------------------------------------------
# Tile-size / VMEM budgeting
# --------------------------------------------------------------------------
def _vmem_budget_and_limit():
    """Per-generation (budget_for_tiling, vmem_limit) in bytes."""
    try:
        cap = int(pltpu.get_tpu_info().vmem_capacity_bytes)
    except Exception:
        cap = 0
    if cap <= 0:
        cap = 64 << 20                 # conservative: v7x per-TC VMEM
    if cap <= (64 << 20):              # v7x: 64 MiB/TC -> ~38 MiB / ~48 MiB
        return int(cap * 0.60), int(cap * 0.75)
    # v5e / v6e: 128 MiB -> ~96 MiB budget / ~112 MiB limit
    return int(cap * 0.75), int(cap * 0.875)


def _vmem_bytes(row_tile, emb_p, ff_chunk, act_bytes, w_bytes):
    x_io = 2 * row_tile * emb_p * act_bytes            # x tile, double-buffered
    o_io = 2 * row_tile * emb_p * act_bytes            # out tile, double-buffered
    w_io = 2 * 2 * emb_p * ff_chunk * w_bytes          # W1^T + W2^T chunks
    b_io = 2 * (ff_chunk + emb_p) * 4                  # bias chunks
    acc = row_tile * emb_p * 4                         # scratch accumulator
    h_tmp = row_tile * ff_chunk * 4                    # intermediate activation
    return x_io + o_io + w_io + b_io + acc + h_tmp


def _pick_ff_chunk(ff_p):
    if ff_p <= 512:
        return ff_p
    for c in (512, 384, 256, 128):
        if ff_p % c == 0:
            return c
    return ff_p  # unreachable: ff_p is a multiple of 128


def _pick_row_tile(n_rows, emb_p, ff_chunk, act_bytes, w_bytes, budget):
    n_up = _round_up(max(n_rows, 1), _SUBLANE)
    tile = _SUBLANE
    for t in (512, 256, 128, 64, 32, 16, 8):
        if t > n_up:
            continue
        if _vmem_bytes(t, emb_p, ff_chunk, act_bytes, w_bytes) <= budget:
            tile = t
            break
    # Ensure at least 2 row tiles so the "parallel" axis can shard across both
    # v7x TensorCores (cheap on single-TC chips: one extra ~0.35 us grid step).
    while tile > _SUBLANE and pl.cdiv(n_up, tile) < 2:
        tile //= 2
    return max(_round_up(tile, _SUBLANE), _SUBLANE)


# --------------------------------------------------------------------------
# Forward wrapper
# --------------------------------------------------------------------------
def feed_forward_module(x, params, *, row_tile=None):
    """out = W2(relu(W1(x))) for x of shape [..., emb] using prepared params."""
    w1t, b1, w2t, b2 = params["w1t"], params["b1"], params["w2t"], params["b2"]
    emb = params["emb"]
    emb_p, ff_p = w1t.shape
    assert x.shape[-1] == emb

    orig_shape = x.shape
    x2d = x.reshape(-1, emb)
    n_rows = x2d.shape[0]

    act_bytes = jnp.dtype(x.dtype).itemsize
    w_bytes = jnp.dtype(w1t.dtype).itemsize
    ff_chunk = _pick_ff_chunk(ff_p)
    n_ff_chunks = ff_p // ff_chunk

    budget, vmem_cap = _vmem_budget_and_limit()
    if row_tile is None:
        row_tile = _pick_row_tile(n_rows, emb_p, ff_chunk, act_bytes, w_bytes,
                                  budget)
    row_tile = max(_round_up(row_tile, _SUBLANE), _SUBLANE)

    grid_m = pl.cdiv(n_rows, row_tile)
    rows_p = grid_m * row_tile

    # Skip the pad/unpad HBM round-trips when the slab is already aligned.
    need_pad = (emb != emb_p) or (rows_p != n_rows)
    if need_pad:
        x_in = jnp.zeros((rows_p, emb_p), x.dtype).at[:n_rows, :emb].set(x2d)
    else:
        x_in = x2d

    est = _vmem_bytes(row_tile, emb_p, ff_chunk, act_bytes, w_bytes)
    vmem_limit = int(min(max(est * 5 // 4 + (4 << 20), 16 << 20), vmem_cap))

    flops = 4 * rows_p * emb_p * ff_p                      # two matmuls
    bytes_accessed = (2 * rows_p * emb_p * act_bytes       # x + out
                      + 2 * emb_p * ff_p * w_bytes         # W1^T + W2^T
                      + (ff_p + emb_p) * 4)                # biases
    cost = pl.CostEstimate(flops=flops, transcendentals=0,
                           bytes_accessed=bytes_accessed)

    out_pad = pl.pallas_call(
        _ffn_kernel,
        out_shape=jax.ShapeDtypeStruct((rows_p, emb_p), x.dtype),
        grid_spec=pltpu.PrefetchScalarGridSpec(
            num_scalar_prefetch=0,
            grid=(grid_m, n_ff_chunks),
            in_specs=[
                pl.BlockSpec((row_tile, emb_p), lambda i, k: (i, 0)),   # x tile
                pl.BlockSpec((emb_p, ff_chunk), lambda i, k: (0, k)),   # W1^T
                pl.BlockSpec((1, ff_chunk),     lambda i, k: (0, k)),   # b1
                pl.BlockSpec((ff_chunk, emb_p), lambda i, k: (k, 0)),   # W2^T
                pl.BlockSpec((1, emb_p),        lambda i, k: (0, 0)),   # b2
            ],
            out_specs=pl.BlockSpec((row_tile, emb_p), lambda i, k: (i, 0)),
            scratch_shapes=[pltpu.VMEM((row_tile, emb_p), jnp.float32)],
        ),
        compiler_params=pltpu.CompilerParams(
            dimension_semantics=("parallel", "arbitrary"),
            vmem_limit_bytes=vmem_limit),
        cost_estimate=cost,
    )(x_in, w1t, b1, w2t, b2)

    out2d = out_pad[:n_rows, :emb] if need_pad else out_pad
    return out2d.reshape(orig_shape)


def _reference(x, w1, b1, w2, b2):
    h = jnp.maximum(x @ w1.T + b1, 0.0)
    return h @ w2.T + b2


if __name__ == "__main__":
    key = jax.random.PRNGKey(0)

    def make_case(key, batch, seq, emb, ff):
        kx, kw1, kb1, kw2, kb2 = jax.random.split(key, 5)
        x = jax.random.normal(kx, (batch, seq, emb), dtype=jnp.float32)
        # nn.Linear layout: weight is [out_features, in_features].
        w1 = jax.random.normal(kw1, (ff, emb), dtype=jnp.float32) * 0.1
        b1 = jax.random.normal(kb1, (ff,), dtype=jnp.float32) * 0.1
        w2 = jax.random.normal(kw2, (emb, ff), dtype=jnp.float32) * 0.1
        b2 = jax.random.normal(kb2, (emb,), dtype=jnp.float32) * 0.1
        return x, w1, b1, w2, b2

    # Case 1: shapes consistent with the module's forward
    # (input1: [batch, seq, embedding_dim], ff_hidden_dim = 64).
    k1, k2 = jax.random.split(key)
    x, w1, b1, w2, b2 = make_case(k1, batch=2, seq=8, emb=32, ff=64)
    params = prepare_ffn_params(w1, b1, w2, b2)      # hoisted: transpose/pad once
    out = jax.block_until_ready(feed_forward_module(x, params))
    ref = _reference(x, w1, b1, w2, b2)
    assert out.shape == x.shape
    assert jnp.allclose(out, ref, atol=1e-4, rtol=1e-4)

    # Case 2: unaligned rows/features and multiple ff chunks (ff_p = 640 -> 5
    # chunks of 128) to exercise the streamed-weight / accumulator path.
    x, w1, b1, w2, b2 = make_case(k2, batch=2, seq=7, emb=48, ff=600)
    params = prepare_ffn_params(w1, b1, w2, b2)
    out = jax.block_until_ready(feed_forward_module(x, params))
    ref = _reference(x, w1, b1, w2, b2)
    assert out.shape == x.shape
    assert jnp.allclose(out, ref, atol=1e-4, rtol=1e-4)

    print("KERNEL_OK")
</pallas_src>

<mosaic_0001>
module attributes {stable_mosaic.version = 11 : i64} {
  func.func @_ffn_kernel(%arg0: i32, %arg1: i32, %arg2: memref<8x128xf32, #tpu.memory_space<vmem>>, %arg3: memref<128x128xf32, #tpu.memory_space<vmem>>, %arg4: memref<1x128xf32, #tpu.memory_space<vmem>>, %arg5: memref<128x128xf32, #tpu.memory_space<vmem>>, %arg6: memref<1x128xf32, #tpu.memory_space<vmem>>, %arg7: memref<8x128xf32, #tpu.memory_space<vmem>>, %arg8: memref<8x128xf32, #tpu.memory_space<vmem>>) attributes {dimension_semantics = [#tpu.dimension_semantics<parallel>, #tpu.dimension_semantics<arbitrary>], iteration_bounds = array<i64: 2, 1>, scalar_prefetch = 0 : i64, scratch_operands = 1 : i64, tpu.core_type = #tpu.core_type<tc>, window_params = [{transform_indices = @transform_0, window_bounds = array<i64: 8, 128>}, {transform_indices = @transform_1, window_bounds = array<i64: 128, 128>}, {transform_indices = @transform_2, window_bounds = array<i64: 1, 128>}, {transform_indices = @transform_3, window_bounds = array<i64: 128, 128>}, {pipeline_mode = #tpu.pipeline_mode<synchronous>, transform_indices = @transform_4, window_bounds = array<i64: 1, 128>}, {transform_indices = @transform_5, window_bounds = array<i64: 8, 128>}]} {
    %c0 = arith.constant 0 : index
    %c0_0 = arith.constant 0 : index
    %0 = vector.load %arg2[%c0, %c0_0] : memref<8x128xf32, #tpu.memory_space<vmem>>, vector<8x128xf32>
    %c0_1 = arith.constant 0 : index
    %c0_2 = arith.constant 0 : index
    %1 = vector.load %arg3[%c0_1, %c0_2] : memref<128x128xf32, #tpu.memory_space<vmem>>, vector<128x128xf32>
    %cst = arith.constant dense<0.000000e+00> : vector<8x128xf32>
    %2 = tpu.matmul %0, %1, %cst {dimension_numbers = #tpu.dot_dimension_numbers<[1], [0], [0], [1], [0, 0, 1, 1], [], []>} : vector<8x128xf32>, vector<128x128xf32>, vector<8x128xf32> -> vector<8x128xf32>
    %c0_3 = arith.constant 0 : index
    %c0_4 = arith.constant 0 : index
    %3 = vector.load %arg4[%c0_3, %c0_4] : memref<1x128xf32, #tpu.memory_space<vmem>>, vector<1x128xf32>
    %4 = vector.broadcast %3 : vector<1x128xf32> to vector<8x128xf32>
    %5 = arith.addf %2, %4 : vector<8x128xf32>
    %cst_5 = arith.constant 0.000000e+00 : f32
    %6 = vector.broadcast %cst_5 : f32 to vector<8x128xf32>
    %7 = arith.maximumf %5, %6 : vector<8x128xf32>
    %c0_6 = arith.constant 0 : index
    %c0_7 = arith.constant 0 : index
    %8 = vector.load %arg5[%c0_6, %c0_7] : memref<128x128xf32, #tpu.memory_space<vmem>>, vector<128x128xf32>
    %cst_8 = arith.constant dense<0.000000e+00> : vector<8x128xf32>
    %9 = tpu.matmul %7, %8, %cst_8 {dimension_numbers = #tpu.dot_dimension_numbers<[1], [0], [0], [1], [0, 0, 1, 1], [], []>} : vector<8x128xf32>, vector<128x128xf32>, vector<8x128xf32> -> vector<8x128xf32>
    %c0_i32 = arith.constant 0 : i32
    %10 = arith.cmpi eq, %arg1, %c0_i32 : i32
    %11 = arith.extui %10 : i1 to i32
    %c0_i32_9 = arith.constant 0 : i32
    %12 = arith.cmpi ne, %11, %c0_i32_9 : i32
    scf.if %12 {
      %c0_14 = arith.constant 0 : index
      %c0_15 = arith.constant 0 : index
      %19 = vector.load %arg8[%c0_14, %c0_15] : memref<8x128xf32, #tpu.memory_space<vmem>>, vector<8x128xf32>
      tpu.vector_store %arg8[%c0_14, %c0_15], %9 {strides = array<i32>} : memref<8x128xf32, #tpu.memory_space<vmem>>, vector<8x128xf32>,
    } else {
    }
    %c0_i32_10 = arith.constant 0 : i32
    %13 = arith.cmpi ne, %arg1, %c0_i32_10 : i32
    %14 = arith.extui %13 : i1 to i32
    %c0_i32_11 = arith.constant 0 : i32
    %15 = arith.cmpi ne, %14, %c0_i32_11 : i32
    scf.if %15 {
      %c0_14 = arith.constant 0 : index
      %c0_15 = arith.constant 0 : index
      %19 = vector.load %arg8[%c0_14, %c0_15] : memref<8x128xf32, #tpu.memory_space<vmem>>, vector<8x128xf32>
      %20 = arith.addf %19, %9 : vector<8x128xf32>
      %c0_16 = arith.constant 0 : index
      %c0_17 = arith.constant 0 : index
      %21 = vector.load %arg8[%c0_16, %c0_17] : memref<8x128xf32, #tpu.memory_space<vmem>>, vector<8x128xf32>
      tpu.vector_store %arg8[%c0_16, %c0_17], %20 {strides = array<i32>} : memref<8x128xf32, #tpu.memory_space<vmem>>, vector<8x128xf32>,
    } else {
    }
    %c0_i32_12 = arith.constant 0 : i32
    %16 = arith.cmpi eq, %arg1, %c0_i32_12 : i32
    %17 = arith.extui %16 : i1 to i32
    %c0_i32_13 = arith.constant 0 : i32
    %18 = arith.cmpi ne, %17, %c0_i32_13 : i32
    scf.if %18 {
      %c0_14 = arith.constant 0 : index
      %c0_15 = arith.constant 0 : index
      %19 = vector.load %arg8[%c0_14, %c0_15] : memref<8x128xf32, #tpu.memory_space<vmem>>, vector<8x128xf32>
      %c0_16 = arith.constant 0 : index
      %c0_17 = arith.constant 0 : index
      %20 = vector.load %arg6[%c0_16, %c0_17] : memref<1x128xf32, #tpu.memory_space<vmem>>, vector<1x128xf32>
      %21 = vector.broadcast %20 : vector<1x128xf32> to vector<8x128xf32>
      %22 = arith.addf %19, %21 : vector<8x128xf32>
      %c0_18 = arith.constant 0 : index
      %c0_19 = arith.constant 0 : index
      %23 = vector.load %arg7[%c0_18, %c0_19] : memref<8x128xf32, #tpu.memory_space<vmem>>, vector<8x128xf32>
      tpu.vector_store %arg7[%c0_18, %c0_19], %22 {strides = array<i32>} : memref<8x128xf32, #tpu.memory_space<vmem>>, vector<8x128xf32>,
    } else {
    }
    return
  }
  func.func @transform_0(%arg0: i32, %arg1: i32) -> (i32, i32) {
    %c0_i32 = arith.constant 0 : i32
    %c0_i32_0 = arith.constant 0 : i32
    return %arg0, %c0_i32 : i32, i32
  }
  func.func @transform_1(%arg0: i32, %arg1: i32) -> (i32, i32) {
    %c0_i32 = arith.constant 0 : i32
    %c0_i32_0 = arith.constant 0 : i32
    return %c0_i32, %arg1 : i32, i32
  }
  func.func @transform_2(%arg0: i32, %arg1: i32) -> (i32, i32) {
    %c0_i32 = arith.constant 0 : i32
    %c0_i32_0 = arith.constant 0 : i32
    return %c0_i32, %arg1 : i32, i32
  }
  func.func @transform_3(%arg0: i32, %arg1: i32) -> (i32, i32) {
    %c0_i32 = arith.constant 0 : i32
    %c0_i32_0 = arith.constant 0 : i32
    return %arg1, %c0_i32 : i32, i32
  }
  func.func @transform_4(%arg0: i32, %arg1: i32) -> (i32, i32) {
    %c0_i32 = arith.constant 0 : i32
    %c0_i32_0 = arith.constant 0 : i32
    %c0_i32_1 = arith.constant 0 : i32
    return %c0_i32, %c0_i32_0 : i32, i32
  }
  func.func @transform_5(%arg0: i32, %arg1: i32) -> (i32, i32) {
    %c0_i32 = arith.constant 0 : i32
    %c0_i32_0 = arith.constant 0 : i32
    return %arg0, %c0_i32 : i32, i32
  }
}

</mosaic_0001>

<bundles_post_ra>
// kernel: tpu_custom_call.1
= control target key start
LH: loop header
LB: loop body
LE: loop exit
PB: predicated region body
PF: predicated region fallthrough
CT: control target
= control target key end

     0   :  { %10 = vsyncpa [#allocation4], 0  ;;  %s1396_s0 = inlined_call_operand.hbm [shape: f32[16,128], index: 0, kind: input, shape index: {}]   ;;  %s1397_s1 = inlined_call_operand.hbm [shape: f32[128,128], index: 1, kind: input, shape index: {}]   ;;  %s1398_s2 = inlined_call_operand.vmem [shape: f32[1,128], index: 2, kind: input, shape index: {}]   ;;  %s1399_s3 = inlined_call_operand.hbm [shape: f32[128,128], index: 3, kind: input, shape index: {}]   ;;  %s1400_s4 = inlined_call_operand.vmem [shape: f32[1,128], index: 4, kind: input, shape index: {}]   ;;  %s1401_s5 = inlined_call_operand.hbm [shape: f32[16,128], index: 5, kind: output, shape index: {}]  }
   0x1   :  { %12 = vsyncpa [#allocation4 + $0x1], 0 }
   0x2   :  { %13 = vsyncpa [#allocation7], 0 }
   0x3   :  { %14 = vsyncpa [#allocation5], 0 }
   0x4   :  { %16 = vsyncpa [#allocation5 + $0x1], 0  ;;  %s1117_s18 = smov 0   ;;  %s1119_s19 = smov 0  }
   0x5   :  { %s1121_s20 = smov 0   ;;  %s1123_s21 = smov 0  }
   0x6   :  { %s1125_s22 = smov 0   ;;  %s1127_s23 = smov 0  }
   0x7 LB: > { %s644_s24 = sadd.s32 4294967295, %s1076_s23   ;;  %s645_s25 = sadd.s32 4294967294, %s1076_s23   ;;  %s1076_s23 = sphi %s1127_s23, %s22_s23   ;;  %s1072_s22 = sphi %s1125_s22, %s1423_s22   ;;  %s1068_s21 = sphi %s1123_s21, %s1422_s21   ;;  %s1064_s20 = sphi %s1121_s20, %s1421_s20   ;;  %s1060_s19 = sphi %s1119_s19, %s1420_s19   ;;  %s1056_s18 = sphi %s1117_s18, %s1419_s18  }
   0x8   : > { %p54_p0 = scmp.ne.s32.totalorder %s1060_s19, %s1056_s18  ;;  %p1151_p1 = scmp.eq.s32.totalorder %s644_s24, 0 }
   0x9   : > { %p1155_p2 = scmp.eq.s32.totalorder %s644_s24, 1  ;;  %p183_p3 = scmp.eq.s32.totalorder %s645_s25, 1 }
   0xa   : > { %s1406_s26 = scalar_select %p1151_p1, 1, 0 }
   0xb   : > { %p1161_p4 = por %p1151_p1, %p54_p0  ;;  %p646_p5 = scmp.ge.s32.totalorder %s1076_s23, 1 }
   0xc   : > { %p1166_p6 = por %p183_p3, %p54_p0  ;;  %p190_p7 = scmp.lt.s32.totalorder %s1076_s23, 3 }
   0xd   : > { %s1408_s28 = scalar_select %p1161_p4, 1, 0 }
   0xe   : > { %s1409_s29 = scalar_select %p1166_p6, 1, 0 }
   0xf   : > { %p1171_p8 = pnand %p646_p5, %p190_p7  ;;  %s1078_s6 = smov [#allocation6]  }
  0x10   : > { %s204_s7 = sshll.u32 %s1078_s6, 4  ;;  %s1079_s9 = smov [#allocation8]   ;;  %s1175_s7 = int_to_ptr.vmem [resolvable:$true] %s204_s7 }
  0x11   : > { %p828_p9 = pneg %p1171_p8  ;;  %s226_s10 = sshll.u32 %s1079_s9, 4  ;;  %s1186_s10 = int_to_ptr.vmem [resolvable:$true] %s226_s10 }
  0x12   : > { %s904_s13 = scalar_lea.hbm %s1397_s1, 2048 }
  0x13   : > { %p1182_p11 = pnand %p828_p9, %p1151_p1  ;;  %p905_p12 = scmp.ne.s32.totalorder %s1397_s1, %s904_s13 }
  0x14   : > { %p911_p5 = scmp.lt.u32.totalorder %s904_s13, %s1397_s1 }
  0x15   : > { %p906_p13 = pneg %p1182_p11 }
  0x17   : > { %p907_p0 = pnand %p906_p13, %p905_p12 }
  0x19   : > { %p908_p3 = pneg %p907_p0 }
  0x1b   : > { %p913_p7 = pnand %p911_p5, %p908_p3 }
  0x1d   : > { %916 = shalt.err (!%p913_p7)
}
  0x1e   : > { %s917_s24 = scalar_lea.vmem %s1175_s7, 2048  ;;  %p925_p1 = scmp.lt.s32.totalorder %s1175_s7, %s1175_s7 }
  0x1f   : > { %p918_p9 = scmp.ne.s32.totalorder %s1175_s7, %s917_s24  ;;  %p926_p12 = scmp.lt.s32.totalorder %s917_s24, %s917_s24 }
  0x21   : > { %p920_p10 = pnand %p918_p9, %p906_p13  ;;  %p927_p0 = por %p926_p12, %p925_p1 }
  0x23   : > { %p921_p6 = pneg %p920_p10 }
  0x25   : > { %p928_p4 = pnand %p927_p0, %p921_p6 }
  0x27   : > { %931 = shalt.err (!%p928_p4)
}
  0x28   : > { %s1080_s25 = smov 128   ;;  %s1081_s6 = smov 8  }
  0x29   : > { %831 = dma.hbm_to_vmem [thread:$0]  (!%p1182_p11), %s1397_s1, 2048, %s1175_s7, [#allocation7], %s1080_s25, %s1080_s25, %s1081_s6  }
  0x2a   : > { %s932_s14 = scalar_lea.hbm %s1399_s3, 2048 }
  0x2b   : > { %p933_p1 = scmp.ne.s32.totalorder %s1399_s3, %s932_s14  ;;  %p939_p10 = scmp.lt.u32.totalorder %s932_s14, %s1399_s3 }
  0x2d   : > { %p935_p4 = pnand %p933_p1, %p906_p13 }
  0x2f   : > { %p936_p6 = pneg %p935_p4 }
  0x31   : > { %p941_p3 = pnand %p939_p10, %p936_p6 }
  0x33   : > { %944 = shalt.err (!%p941_p3)
}
  0x34   : > { %s945_s7 = scalar_lea.vmem %s1186_s10, 2048  ;;  %p953_p12 = scmp.lt.s32.totalorder %s1186_s10, %s1186_s10 }
  0x35   : > { %p946_p5 = scmp.ne.s32.totalorder %s1186_s10, %s945_s7  ;;  %p954_p0 = scmp.lt.s32.totalorder %s945_s7, %s945_s7 }
  0x37   : > { %p948_p7 = pnand %p946_p5, %p906_p13  ;;  %p955_p1 = por %p954_p0, %p953_p12 }
  0x39   : > { %p949_p9 = pneg %p948_p7 }
  0x3b   : > { %p956_p4 = pnand %p955_p1, %p949_p9 }
  0x3d   : > { %959 = shalt.err (!%p956_p4)
}
  0x3e   : > { %834 = dma.hbm_to_vmem [thread:$0]  (!%p1182_p11), %s1399_s3, 2048, %s1186_s10, [#allocation7], %s1080_s25, %s1080_s25, %s1081_s6  }
  0x3f   : > { %s34_s12 = sadd.s32 1, %s1072_s22  ;;  %s41_s13 = sadd.s32 1, %s1064_s20 }
  0x40   : > { %p36_p13 = scmp.ge.s32.totalorder %s34_s12, 2  ;;  %p48_p6 = scmp.ne.s32.totalorder %s1064_s20, %s1060_s19 }
  0x41   : > { %p49_p10 = scmp.eq.s32.totalorder %s1076_s23, 0  ;;  %p845_p3 = scmp.lt.s32.totalorder %s1076_s23, 2 }
  0x42   : > { %s1425_s12 = smov (%p36_p13, %s34_s12), 0  ;;  %p1250_p7 = por %p1155_p2, %p48_p6 }
  0x43   : > { %p50_p5 = por %p49_p10, %p48_p6  ;;  %s38_s14 = ssub.s32 %s1072_s22, %s1425_s12 }
  0x44   : > { %s1412_s8 = scalar_select %p1250_p7, 1, 0 }
  0x45   : > { %s243_s15 = sand.u32 1, %s1064_s20   ;;  %p39_p9 = scmp.eq.s32.totalorder %s38_s14, 0 }
  0x46   : > { %s651_s10 = sshll.u32 %s243_s15, 3  ;;  %s652_s25 = sshll.u32 %s1072_s22, 7 }
  0x47   : > { %s1259_s6 = scalar_select %p39_p9, %s1064_s20, %s41_s13  }
  0x48   : > { %s1264_s24 = scalar_lea.hbm %s1396_s0, %s652_s25  ;;  %s247_s27 = scalar_lea.vmem [#allocation3], %s651_s10 }
  0x49   : > { %s254_s7 = sshll.u32 %s247_s27, 4  ;;  %p1268_p2 = pnand %p845_p3, %p50_p5  ;;  %s1272_s7 = int_to_ptr.vmem [resolvable:$true] %s254_s7 }
  0x4a   : > { %s244_s11 = scalar_lea.sflag [#allocation4], %s243_s15  ;;  %s960_s13 = scalar_lea.hbm %s1264_s24, 128 }
  0x4b   : > { %p961_p11 = scmp.ne.s32.totalorder %s1264_s24, %s960_s13  ;;  %p962_p12 = pneg %p1268_p2 }
  0x4c   : > { %s965_s25 = scalar_lea.hbm %s1396_s0, 256  ;;  %p966_p4 = scmp.lt.u32.totalorder %s1264_s24, %s1396_s0 }
  0x4d   : > { %p963_p0 = pnand %p962_p12, %p961_p11  ;;  %p967_p13 = scmp.lt.u32.totalorder %s965_s25, %s960_s13 }
  0x4e   : > { %p969_p10 = scmp.lt.u32.totalorder %s960_s13, %s1264_s24 }
  0x4f   : > { %p964_p1 = pneg %p963_p0  ;;  %p968_p6 = por %p967_p13, %p966_p4 }
  0x51   : > { %p970_p3 = por %p969_p10, %p968_p6 }
  0x53   : > { %p971_p5 = pnand %p970_p3, %p964_p1 }
  0x55   : > { %974 = shalt.err (!%p971_p5)
}
  0x56   : > { %s975_s15 = scalar_lea.vmem %s1272_s7, 128  ;;  %s1082_s27 = smov [#allocation3]  }
  0x57   : > { %p976_p9 = scmp.ne.s32.totalorder %s1272_s7, %s975_s15  ;;  %s980_s14 = sshll.u32 %s1082_s27, 4  ;;  %s981_s14 = int_to_ptr.vmem [resolvable:$false] %s980_s14 }
  0x58   : > { %s982_s10 = scalar_lea.vmem %s981_s14, 256  ;;  %p983_p7 = scmp.lt.s32.totalorder %s1272_s7, %s981_s14 }
  0x59   : > { %p978_p11 = pnand %p976_p9, %p962_p12  ;;  %p984_p4 = scmp.lt.s32.totalorder %s982_s10, %s975_s15 }
  0x5b   : > { %p979_p0 = pneg %p978_p11  ;;  %p985_p13 = por %p984_p4, %p983_p7 }
  0x5d   : > { %p986_p6 = pnand %p985_p13, %p979_p0 }
  0x5f   : > { %989 = shalt.err (!%p986_p6)
}
  0x60   : > { %838 = dma.hbm_to_vmem [thread:$0]  (!%p1268_p2), %s1264_s24, 128, %s1272_s7, %s244_s11  }
  0x61   : > { %263 = sbr.rel (%p1171_p8) target bundleno = 587 (0x24b), region = 40  ;;  %s1302_s13 = sand.u32 (!%p1171_p8), 1, %s1060_s19  }
  0x62   : > { %s654_s25 = sshll.u32 (!%p1171_p8), %s1302_s13, 3  ;;  %s266_s16 = scalar_lea.sflag (!%p1171_p8), [#allocation4], %s1302_s13 }
  0x63   : > { %s1308_s17 = scalar_lea.vmem (!%p1171_p8), [#allocation3], %s654_s25  ;;  %p1414_p7 = scmp.ne.s32.totalorder (!%p1171_p8), %s1408_s28, 0 }
  0x68   : > { %1043 = dma.done.wait (%p1414_p7), %s266_s16, 128  }
  0x69   : > { %1045 = vsyncadd (%p1414_p7), %s266_s16, 4294967168  ;;  %p1415_p2 = scmp.ne.s32.totalorder %s1406_s26, 0 }
  0x6b   : > { %1047 = dma.done.wait (%p1415_p2), [#allocation7], 4096  }
  0x6c   : > { %1049 = vsyncadd (%p1415_p2), [#allocation7], 4294963200  ;;  %v1083_v0 = vmov 0.0|0.0   ;;  %vm1084_vm0 = vmmov 0   ;;  %v1085_v1 = vmov 0.0   ;;  %v312_v2 = vld [vmem:[#allocation6] sm:$0xff] }
  0x6d   : > { %768 = vmatprep.subr.bf16.mxu0 %v1083_v0  ;;  %730 = vmatprep.mubr.msk.f32.mxu0 %vm1084_vm0, %v1085_v1  ;;  %v313_v3 = vld [vmem:[#allocation6 + $0x8] sm:$0xff]  ;;  %v314_v4 = vld [vmem:[#allocation6 + $0x10] sm:$0xff]  ;;  %v315_v6 = vld [vmem:[#allocation6 + $0x18] sm:$0xff]  ;;  %s661_s7 = sshll.u32 %s1068_s21, 7  ;;  %s306_s9 = scalar_lea.vmem [#allocation9], %s654_s25 }
  0x6e   : > { %792 = vmatprep.subr.bf16.mxu1 %v1083_v0  ;;  %765 = vmatprep.mubr.msk.f32.mxu1 %vm1084_vm0, %v1085_v1  ;;  %v769_v5 = vpack.c.bf16 %v313_v3, %v312_v2  ;;  %v772_v7 = vpack.c.bf16 %v315_v6, %v314_v4  ;;  %v316_v8 = vld [vmem:[#allocation6 + $0x20] sm:$0xff]  ;;  %v317_v9 = vld [vmem:[#allocation6 + $0x28] sm:$0xff]  ;;  %v408_v12 = vld [vmem:[#allocation8 + $0x10] sm:$0xff]  ;;  %s531_s11 = sshll.u32 %s306_s9, 4  ;;  %s1347_s14 = scalar_lea.hbm %s1401_s5, %s661_s7  ;;  %s1349_s11 = int_to_ptr.vmem [resolvable:$true] %s531_s11 }
  0x6f   : > { %v406_v10 = vld [vmem:[#allocation8] sm:$0xff]  ;;  %v407_v11 = vld [vmem:[#allocation8 + $0x8] sm:$0xff]  ;;  %v409_v13 = vld [vmem:[#allocation8 + $0x18] sm:$0xff]  ;;  %v775_v14 = vpack.c.bf16 %v317_v9, %v316_v8  ;;  %s518_s10 = scalar_lea.sflag [#allocation5], %s1302_s13  ;;  %s990_s16 = scalar_lea.vmem %s1349_s11, 128 }
  0x70   : > { %770 = vmatpush3.bf16.msra.mxu0 %v769_v5  ;;  %v793_v15 = vpack.c.bf16 %v407_v11, %v406_v10  ;;  %v318_v16 = vld [vmem:[#allocation6 + $0x30] sm:$0xff]  ;;  %v319_v17 = vld [vmem:[#allocation6 + $0x38] sm:$0xff]  ;;  %v796_v18 = vpack.c.bf16 %v409_v13, %v408_v12  ;;  %v410_v19 = vld [vmem:[#allocation8 + $0x20] sm:$0xff]  ;;  %p991_p8 = scmp.ne.s32.totalorder %s1349_s11, %s990_s16  ;;  %p1416_p12 = scmp.ne.s32.totalorder %s1412_s8, 0 }
  0x71   : > { %771 = vmatprep.subr.bf16.mxu0 %v1083_v0  ;;  %v411_v20 = vld [vmem:[#allocation8 + $0x28] sm:$0xff]  ;;  %v778_v21 = vpack.c.bf16 %v319_v17, %v318_v16  ;;  %v320_v22 = vld [vmem:[#allocation6 + $0x40] sm:$0xff]  ;;  %v412_v25 = vld [vmem:[#allocation8 + $0x30] sm:$0xff]  ;;  %s1086_s21 = smov [#allocation9]  }
  0x72   : > { %794 = vmatpush3.bf16.msra.mxu1 %v793_v15  ;;  %v321_v23 = vld [vmem:[#allocation6 + $0x48] sm:$0xff]  ;;  %v799_v24 = vpack.c.bf16 %v411_v20, %v410_v19  ;;  %v413_v26 = vld [vmem:[#allocation8 + $0x38] sm:$0xff]  ;;  %v322_v28 = vld [vmem:[#allocation6 + $0x50] sm:$0xff]  ;;  %p992_p1 = pnand %p991_p8, %p1416_p12  ;;  %s994_s25 = sshll.u32 %s1086_s21, 4  ;;  %s995_s25 = int_to_ptr.vmem [resolvable:$false] %s994_s25 }
  0x73   : > { %795 = vmatprep.subr.bf16.mxu1 %v1083_v0  ;;  %v781_v27 = vpack.c.bf16 %v321_v23, %v320_v22  ;;  %v323_v29 = vld [vmem:[#allocation6 + $0x58] sm:$0xff]  ;;  %v802_v30 = vpack.c.bf16 %v413_v26, %v412_v25  ;;  %v414_v31 = vld [vmem:[#allocation8 + $0x40] sm:$0xff]  ;;  %v415_v32 = vld [vmem:[#allocation8 + $0x48] sm:$0xff]  ;;  %p997_p3 = scmp.lt.s32.totalorder %s1349_s11, %s995_s25 }
  0x74   : > { %773 = vmatpush3.bf16.msra.mxu0 %v772_v7  ;;  %v784_v33 = vpack.c.bf16 %v323_v29, %v322_v28  ;;  %v324_v34 = vld [vmem:[#allocation6 + $0x60] sm:$0xff]  ;;  %v325_v35 = vld [vmem:[#allocation6 + $0x68] sm:$0xff]  ;;  %v805_v36 = vpack.c.bf16 %v415_v32, %v414_v31  ;;  %v416_v37 = vld [vmem:[#allocation8 + $0x50] sm:$0xff]  ;;  %p993_p10 = pneg %p992_p1 }
  0x75   : > { %774 = vmatprep.subr.bf16.mxu0 %v1083_v0  ;;  %v417_v38 = vld [vmem:[#allocation8 + $0x58] sm:$0xff]  ;;  %v787_v39 = vpack.c.bf16 %v325_v35, %v324_v34  ;;  %v326_v40 = vld [vmem:[#allocation6 + $0x70] sm:$0xff]  ;;  %v418_v43 = vld [vmem:[#allocation8 + $0x60] sm:$0xff] }
  0x76   : > { %797 = vmatpush3.bf16.msra.mxu1 %v796_v18  ;;  %v327_v41 = vld [vmem:[#allocation6 + $0x78] sm:$0xff]  ;;  %v808_v42 = vpack.c.bf16 %v417_v38, %v416_v37  ;;  %v419_v44 = vld [vmem:[#allocation8 + $0x68] sm:$0xff]  ;;  %v420_v48 = vld [vmem:[#allocation8 + $0x70] sm:$0xff] }
  0x77   : > { %798 = vmatprep.subr.bf16.mxu1 %v1083_v0  ;;  %v790_v45 = vpack.c.bf16 %v327_v41, %v326_v40  ;;  %v811_v46 = vpack.c.bf16 %v419_v44, %v418_v43  ;;  %v311_v47 = vld [vmem:[%s1308_s17] sm:$0xff]  ;;  %s996_s17 = scalar_lea.vmem %s995_s25, 256 }
  0x78   : > { %776 = vmatpush3.bf16.msra.mxu0 %v775_v14  ;;  %v421_v49 = vld [vmem:[#allocation8 + $0x78] sm:$0xff]  ;;  %v658_v51 = vld [vmem:[%s1398_s2] ss:$0 sm:$0xff]  ;;  %p998_p5 = scmp.lt.s32.totalorder %s996_s17, %s990_s16 }
  0x79   : > { %777 = vmatprep.subr.bf16.mxu0 %v1083_v0  ;;  %v814_v50 = vpack.c.bf16 %v421_v49, %v420_v48  ;;  %v659_v56 = vld [vmem:[%s1400_s4] ss:$0 sm:$0xff] }
  0x7a   : > { %800 = vmatpush3.bf16.msra.mxu1 %v799_v24  ;;  %p999_p9 = por %p998_p5, %p997_p3 }
  0x7b   : > { %801 = vmatprep.subr.bf16.mxu1 %v1083_v0 }
  0x7c   : > { %779 = vmatpush3.bf16.msra.mxu0 %v778_v21  ;;  %p1000_p11 = pnand %p999_p9, %p993_p10 }
  0x7d   : > { %780 = vmatprep.subr.bf16.mxu0 %v1083_v0 }
  0x7e   : > { %803 = vmatpush3.bf16.msra.mxu1 %v802_v30 }
  0x7f   : > { %804 = vmatprep.subr.bf16.mxu1 %v1083_v0 }
  0x80   : > { %782 = vmatpush3.bf16.msra.mxu0 %v781_v27 }
  0x81   : > { %783 = vmatprep.subr.bf16.mxu0 %v1083_v0 }
  0x82   : > { %806 = vmatpush3.bf16.msra.mxu1 %v805_v36 }
  0x83   : > { %807 = vmatprep.subr.bf16.mxu1 %v1083_v0 }
  0x84   : > { %785 = vmatpush3.bf16.msra.mxu0 %v784_v33 }
  0x85   : > { %786 = vmatprep.subr.bf16.mxu0 %v1083_v0 }
  0x86   : > { %809 = vmatpush3.bf16.msra.mxu1 %v808_v42 }
  0x87   : > { %810 = vmatprep.subr.bf16.mxu1 %v1083_v0 }
  0x88   : > { %788 = vmatpush3.bf16.msra.mxu0 %v787_v39 }
  0x89   : > { %789 = vmatprep.subr.bf16.mxu0 %v1083_v0 }
  0x8a   : > { %812 = vmatpush3.bf16.msra.mxu1 %v811_v46 }
  0x8b   : > { %813 = vmatprep.subr.bf16.mxu1 %v1083_v0 }
  0x8c   : > { %791 = vmatpush3.bf16.msra.mxu0 %v790_v45 }
  0x8e   : > { %815 = vmatpush3.bf16.msra.mxu1 %v814_v50 }
  0x8f   : > { %731 = vmatmul.mubr.f32.vlgmr.msra.gmra.mrb[0].mxu0 %v311_v47 }
 0x162   : > { %v401_v52 = vpop.f32.mrb[0].mxu0 }
 0x163   : > { %v402_v53 = vadd.f32 %v658_v51, %v401_v52  ;;  %v732_v54 = vpop.f32.mrb[1].mxu0 }
 0x165   : > { %v405_v55 = vmax.f32 %v402_v53, 0.0 }
 0x167   : > { %766 = vmatmul.mubr.f32.vlgmr.msra.gmra.mrb[0].mxu1 %v405_v55 }
 0x23a   : > { %v488_v57 = vpop.f32.mrb[0].mxu1 }
 0x23b   : > { %v515_v58 = vadd.f32 %v659_v56, %v488_v57  ;;  %v767_v59 = vpop.f32.mrb[1].mxu1 }
 0x23d   : > { %516 = vst [vmem:[%s306_s9] sm:$0xff] %v515_v58 }
 0x23e   : > { %1003 = shalt.err (!%p1000_p11)
}
 0x23f   : > { %s1004_s13 = scalar_lea.hbm %s1347_s14, 128  ;;  %s1008_s30 = scalar_lea.hbm %s1401_s5, 256 }
 0x240   : > { %p1005_p0 = scmp.ne.s32.totalorder %s1347_s14, %s1004_s13  ;;  %p1009_p6 = scmp.lt.u32.totalorder %s1347_s14, %s1401_s5 }
 0x241   : > { %p1010_p7 = scmp.lt.u32.totalorder %s1008_s30, %s1004_s13  ;;  %p1012_p8 = scmp.lt.u32.totalorder %s1004_s13, %s1347_s14 }
 0x242   : > { %p1006_p4 = pnand %p1005_p0, %p1416_p12 }
 0x243   : > { %p1011_p2 = por %p1010_p7, %p1009_p6 }
 0x244   : > { %p1007_p13 = pneg %p1006_p4 }
 0x245   : > { %p1013_p1 = por %p1012_p8, %p1011_p2 }
 0x247   : > { %p1014_p10 = pnand %p1013_p1, %p1007_p13 }
 0x249   : > { %1017 = shalt.err (!%p1014_p10)
}
 0x24a   : > { %826 = dma.vmem_to_hbm [thread:$0]  (%p1416_p12), %s1349_s11, 128, %s1347_s14, %s518_s10  }
 0x24b PF: > { %s543_s9 = sand.u32 1, %s1056_s18   ;;  %p1417_p3 = scmp.ne.s32.totalorder %s1409_s29, 0 }
 0x24c   : > { %p1418_p5 = scmp.ge.s32.totalorder %s1076_s23, 2  ;;  %s544_s15 = scalar_lea.sflag [#allocation5], %s543_s9 }
 0x24e   : > { %p840_p9 = pnand %p1418_p5, %p1417_p3 }
 0x250   : > { %1051 = dma.done.wait (!%p840_p9), %s544_s15, 128  }
 0x251   : > { %1053 = vsyncadd (!%p840_p9), %s544_s15, 4294967168  ;;  %s22_s23 = sadd.s32 1, %s1076_s23   ;;  %s1419_s18 = smov %s1060_s19 }
 0x252   : > { %p19_p11 = scmp.ge.s32.totalorder %s22_s23, 4   ;;  %s1420_s19 = smov %s1064_s20 }
 0x253   : > { %s1421_s20 = smov %s1259_s6  ;;  %s1422_s21 = smov %s1072_s22 }
 0x254   : > { %s1423_s22 = smov %s1425_s12  ;;  %21 = sbr.rel (!%p19_p11) target bundleno = 7 (0x7), region = 110 }
 0x25b   :  { %549 = vsyncpa [#allocation4], 1 }
 0x25c   :  { %551 = vsyncpa [#allocation4 + $0x1], 1 }
 0x25d   :  { %552 = vsyncpa [#allocation7], 1 }
 0x25e   :  { %553 = vsyncpa [#allocation5], 1 }
 0x25f   :  { %555 = vsyncpa [#allocation5 + $0x1], 1 }

</bundles_post_ra>
